<compile_context>
chip_gen: v7x
topology: tpu7x:2x2x1
jax: 0.10.0
libtpu: 0.0.40
codegen_flags: <defaults>
</compile_context>

<pallas_src>
import jax
import jax.numpy as jnp
from jax.experimental import pallas as pl
from jax.experimental.pallas import tpu as pltpu


def se_kernel(x_ref, w1t_ref, b1_ref, w2t_ref, b2_ref, o_ref):
    # x_ref block: (B_tile, C, H*W)  -- C in sublanes, H*W in lanes.
    x = x_ref[...]                                            # native dtype

    # Global average pool over spatial positions (lane-axis reduction),
    # accumulated in float32 (exact mean, matches the PyTorch reference).
    pooled = jnp.mean(x.astype(jnp.float32), axis=-1)         # (B_tile, C)

    # reduce 1x1 conv + Swish   (B_tile, C) @ (C, se)
    h = jnp.dot(pooled, w1t_ref[...].astype(jnp.float32),
                preferred_element_type=jnp.float32)
    h = h + b1_ref[...].astype(jnp.float32)                   # (B_tile, se)
    h = h * jax.nn.sigmoid(h)                                 # Swish

    # expand 1x1 conv + Sigmoid (B_tile, se) @ (se, C)
    s = jnp.dot(h, w2t_ref[...].astype(jnp.float32),
                preferred_element_type=jnp.float32)
    s = s + b2_ref[...].astype(jnp.float32)                   # (B_tile, C)
    s = jax.nn.sigmoid(s).astype(x.dtype)

    # Broadcast scale along lanes and rescale in the native dtype.
    o_ref[...] = (x * s[:, :, None]).astype(o_ref.dtype)


def squeeze_excitation(x_nchw, w1, b1, w2, b2,
                       *, vmem_limit_bytes=32 * 1024 * 1024):
    """x_nchw: (N, C, H, W); w1: (se, C), b1: (se,), w2: (C, se), b2: (C,)."""
    N, C, H, W = x_nchw.shape
    se = w1.shape[0]
    HW = H * W

    # Free reshape (contiguous NCHW): no transpose, no extra HBM traffic.
    x_ncs = x_nchw.reshape(N, C, HW)

    # Pick a batch tile so input + output blocks (each double-buffered) fit
    # comfortably under the scoped-VMEM limit (important on v7x: 64 MiB chip).
    itemsize = jnp.dtype(x_nchw.dtype).itemsize
    per_image = C * HW * itemsize
    budget = max(vmem_limit_bytes // 8, per_image)   # ~1/8 of limit per block
    b_tile = max(1, min(N, budget // per_image))
    while N % b_tile != 0:                           # keep the grid exact
        b_tile -= 1

    w1t = jnp.transpose(w1)          # (C, se)   tiny, one-time
    w2t = jnp.transpose(w2)          # (se, C)
    b1r = b1.reshape(1, se)
    b2r = b2.reshape(1, C)

    out_ncs = pl.pallas_call(
        se_kernel,
        out_shape=jax.ShapeDtypeStruct((N, C, HW), x_nchw.dtype),
        grid_spec=pltpu.PrefetchScalarGridSpec(
            num_scalar_prefetch=0,
            grid=(N // b_tile,),
            in_specs=[
                pl.BlockSpec((b_tile, C, HW), lambda n: (n, 0, 0)),  # x
                pl.BlockSpec((C, se), lambda n: (0, 0)),             # w1^T
                pl.BlockSpec((1, se), lambda n: (0, 0)),             # b1
                pl.BlockSpec((se, C), lambda n: (0, 0)),             # w2^T
                pl.BlockSpec((1, C), lambda n: (0, 0)),              # b2
            ],
            out_specs=pl.BlockSpec((b_tile, C, HW), lambda n: (n, 0, 0)),
        ),
        compiler_params=pltpu.CompilerParams(
            # Each batch tile is independent -> shard across TCs on v7x.
            dimension_semantics=("parallel",),
            vmem_limit_bytes=vmem_limit_bytes,
        ),
    )(x_ncs, w1t, b1r, w2t, b2r)

    return out_ncs.reshape(N, C, H, W)


def reference_se(x, w1, b1, w2, b2):
    """Pure-JAX reference mirroring the PyTorch module (NCHW)."""
    x_se = jnp.mean(x, axis=(-2, -1), keepdims=True)                  # (N,C,1,1)
    h = jnp.einsum('sc,ncij->nsij', w1, x_se) + b1[None, :, None, None]
    h = h * jax.nn.sigmoid(h)                                         # Swish
    s = jnp.einsum('cs,nsij->ncij', w2, h) + b2[None, :, None, None]
    s = jax.nn.sigmoid(s)
    return s * x


if __name__ == "__main__":
    # Small shapes consistent with the module: N=2, in_planes=4, se_planes=2, 16x16.
    N, C, SE, H, W = 2, 4, 2, 16, 16

    key = jax.random.PRNGKey(0)
    kx, k1, k2, k3, k4 = jax.random.split(key, 5)

    x = jax.random.normal(kx, (N, C, H, W), dtype=jnp.float32)
    # Conv2d(in_planes, se_planes, k=1) weight (se, C, 1, 1) -> (se, C); bias (se,)
    w_reduce = jax.random.normal(k1, (SE, C), dtype=jnp.float32) * 0.5
    b_reduce = jax.random.normal(k2, (SE,), dtype=jnp.float32) * 0.1
    # Conv2d(se_planes, in_planes, k=1) weight (C, se, 1, 1) -> (C, se); bias (C,)
    w_expand = jax.random.normal(k3, (C, SE), dtype=jnp.float32) * 0.5
    b_expand = jax.random.normal(k4, (C,), dtype=jnp.float32) * 0.1

    out = squeeze_excitation(x, w_reduce, b_reduce, w_expand, b_expand)
    out = jax.block_until_ready(out)

    ref = reference_se(x, w_reduce, b_reduce, w_expand, b_expand)
    assert out.shape == x.shape and out.dtype == x.dtype
    assert jnp.allclose(out, ref, atol=1e-5, rtol=1e-5), "mismatch vs reference"

    print("KERNEL_OK")
</pallas_src>

<mosaic_0001>
module attributes {stable_mosaic.version = 11 : i64} {
  func.func @se_kernel(%arg0: i32, %arg1: memref<2x4x256xf32, #tpu.memory_space<vmem>>, %arg2: memref<4x2xf32, #tpu.memory_space<vmem>>, %arg3: memref<1x2xf32, #tpu.memory_space<vmem>>, %arg4: memref<2x4xf32, #tpu.memory_space<vmem>>, %arg5: memref<1x4xf32, #tpu.memory_space<vmem>>, %arg6: memref<2x4x256xf32, #tpu.memory_space<vmem>>) attributes {dimension_semantics = [#tpu.dimension_semantics<parallel>], iteration_bounds = array<i64: 1>, scalar_prefetch = 0 : i64, scratch_operands = 0 : i64, tpu.core_type = #tpu.core_type<tc>, window_params = [{transform_indices = @transform_0, window_bounds = array<i64: 2, 4, 256>}, {pipeline_mode = #tpu.pipeline_mode<synchronous>, transform_indices = @transform_1, window_bounds = array<i64: 4, 2>}, {pipeline_mode = #tpu.pipeline_mode<synchronous>, transform_indices = @transform_2, window_bounds = array<i64: 1, 2>}, {pipeline_mode = #tpu.pipeline_mode<synchronous>, transform_indices = @transform_3, window_bounds = array<i64: 2, 4>}, {pipeline_mode = #tpu.pipeline_mode<synchronous>, transform_indices = @transform_4, window_bounds = array<i64: 1, 4>}, {transform_indices = @transform_5, window_bounds = array<i64: 2, 4, 256>}]} {
    %c0 = arith.constant 0 : index
    %c0_0 = arith.constant 0 : index
    %c0_1 = arith.constant 0 : index
    %0 = vector.load %arg1[%c0, %c0_0, %c0_1] : memref<2x4x256xf32, #tpu.memory_space<vmem>>, vector<2x4x256xf32>
    %cst = arith.constant dense<0.000000e+00> : vector<2x4xf32>
    %1 = vector.multi_reduction <add>, %0, %cst [2] : vector<2x4x256xf32> to vector<2x4xf32>
    %cst_2 = arith.constant 2.560000e+02 : f32
    %2 = vector.broadcast %cst_2 : f32 to vector<2x4xf32>
    %3 = arith.divf %1, %2 : vector<2x4xf32>
    %c0_3 = arith.constant 0 : index
    %c0_4 = arith.constant 0 : index
    %4 = vector.load %arg2[%c0_3, %c0_4] : memref<4x2xf32, #tpu.memory_space<vmem>>, vector<4x2xf32>
    %cst_5 = arith.constant dense<0.000000e+00> : vector<2x2xf32>
    %5 = tpu.matmul %3, %4, %cst_5 {dimension_numbers = #tpu.dot_dimension_numbers<[1], [0], [0], [1], [0, 0, 1, 1], [], []>} : vector<2x4xf32>, vector<4x2xf32>, vector<2x2xf32> -> vector<2x2xf32>
    %c0_6 = arith.constant 0 : index
    %c0_7 = arith.constant 0 : index
    %6 = vector.load %arg3[%c0_6, %c0_7] : memref<1x2xf32, #tpu.memory_space<vmem>>, vector<1x2xf32>
    %7 = vector.broadcast %6 : vector<1x2xf32> to vector<2x2xf32>
    %8 = arith.addf %5, %7 : vector<2x2xf32>
    %9 = arith.negf %8 : vector<2x2xf32>
    %10 = math.exp %9 : vector<2x2xf32>
    %cst_8 = arith.constant 1.000000e+00 : f32
    %11 = vector.broadcast %cst_8 : f32 to vector<2x2xf32>
    %12 = arith.addf %11, %10 : vector<2x2xf32>
    %13 = arith.divf %11, %12 : vector<2x2xf32>
    %14 = arith.mulf %8, %13 : vector<2x2xf32>
    %c0_9 = arith.constant 0 : index
    %c0_10 = arith.constant 0 : index
    %15 = vector.load %arg4[%c0_9, %c0_10] : memref<2x4xf32, #tpu.memory_space<vmem>>, vector<2x4xf32>
    %cst_11 = arith.constant dense<0.000000e+00> : vector<2x4xf32>
    %16 = tpu.matmul %14, %15, %cst_11 {dimension_numbers = #tpu.dot_dimension_numbers<[1], [0], [0], [1], [0, 0, 1, 1], [], []>} : vector<2x2xf32>, vector<2x4xf32>, vector<2x4xf32> -> vector<2x4xf32>
    %c0_12 = arith.constant 0 : index
    %c0_13 = arith.constant 0 : index
    %17 = vector.load %arg5[%c0_12, %c0_13] : memref<1x4xf32, #tpu.memory_space<vmem>>, vector<1x4xf32>
    %18 = vector.broadcast %17 : vector<1x4xf32> to vector<2x4xf32>
    %19 = arith.addf %16, %18 : vector<2x4xf32>
    %20 = arith.negf %19 : vector<2x4xf32>
    %21 = math.exp %20 : vector<2x4xf32>
    %cst_14 = arith.constant 1.000000e+00 : f32
    %22 = vector.broadcast %cst_14 : f32 to vector<2x4xf32>
    %23 = arith.addf %22, %21 : vector<2x4xf32>
    %24 = arith.divf %22, %23 : vector<2x4xf32>
    %25 = vector.shape_cast %24 : vector<2x4xf32> to vector<2x4x1xf32>
    %26 = vector.broadcast %25 : vector<2x4x1xf32> to vector<2x4x256xf32>
    %27 = arith.mulf %0, %26 : vector<2x4x256xf32>
    %c0_15 = arith.constant 0 : index
    %c0_16 = arith.constant 0 : index
    %c0_17 = arith.constant 0 : index
    %28 = vector.load %arg6[%c0_15, %c0_16, %c0_17] : memref<2x4x256xf32, #tpu.memory_space<vmem>>, vector<2x4x256xf32>
    tpu.vector_store %arg6[%c0_15, %c0_16, %c0_17], %27 {strides = array<i32>} : memref<2x4x256xf32, #tpu.memory_space<vmem>>, vector<2x4x256xf32>,
    return
  }
  func.func @transform_0(%arg0: i32) -> (i32, i32, i32) {
    %c0_i32 = arith.constant 0 : i32
    %c0_i32_0 = arith.constant 0 : i32
    %c0_i32_1 = arith.constant 0 : i32
    return %arg0, %c0_i32, %c0_i32_0 : i32, i32, i32
  }
  func.func @transform_1(%arg0: i32) -> (i32, i32) {
    %c0_i32 = arith.constant 0 : i32
    %c0_i32_0 = arith.constant 0 : i32
    %c0_i32_1 = arith.constant 0 : i32
    return %c0_i32, %c0_i32_0 : i32, i32
  }
  func.func @transform_2(%arg0: i32) -> (i32, i32) {
    %c0_i32 = arith.constant 0 : i32
    %c0_i32_0 = arith.constant 0 : i32
    %c0_i32_1 = arith.constant 0 : i32
    return %c0_i32, %c0_i32_0 : i32, i32
  }
  func.func @transform_3(%arg0: i32) -> (i32, i32) {
    %c0_i32 = arith.constant 0 : i32
    %c0_i32_0 = arith.constant 0 : i32
    %c0_i32_1 = arith.constant 0 : i32
    return %c0_i32, %c0_i32_0 : i32, i32
  }
  func.func @transform_4(%arg0: i32) -> (i32, i32) {
    %c0_i32 = arith.constant 0 : i32
    %c0_i32_0 = arith.constant 0 : i32
    %c0_i32_1 = arith.constant 0 : i32
    return %c0_i32, %c0_i32_0 : i32, i32
  }
  func.func @transform_5(%arg0: i32) -> (i32, i32, i32) {
    %c0_i32 = arith.constant 0 : i32
    %c0_i32_0 = arith.constant 0 : i32
    %c0_i32_1 = arith.constant 0 : i32
    return %arg0, %c0_i32, %c0_i32_0 : i32, i32, i32
  }
}

</mosaic_0001>

<bundles_post_ra>
// kernel: tpu_custom_call.1
= control target key start
LH: loop header
LB: loop body
LE: loop exit
PB: predicated region body
PF: predicated region fallthrough
CT: control target
= control target key end

     0   :  { %10 = vsyncpa [#allocation3], 0  ;;  %s490_s0 = inlined_call_operand.hbm [shape: f32[2,4,256], index: 0, kind: input, shape index: {}]   ;;  %s491_s1 = inlined_call_operand.vmem [shape: f32[4,2], index: 1, kind: input, shape index: {}]   ;;  %s492_s2 = inlined_call_operand.vmem [shape: f32[1,2], index: 2, kind: input, shape index: {}]   ;;  %s493_s3 = inlined_call_operand.vmem [shape: f32[2,4], index: 3, kind: input, shape index: {}]   ;;  %s494_s4 = inlined_call_operand.vmem [shape: f32[1,4], index: 4, kind: input, shape index: {}]   ;;  %s495_s5 = inlined_call_operand.hbm [shape: f32[2,4,256], index: 5, kind: output, shape index: {}]  }
   0x1   :  { %11 = vsyncpa [#allocation4], 0  ;;  %s394_s18 = smov [#allocation2]   ;;  %s346_s22 = scalar_lea.hbm %s490_s0, 256 }
   0x2   :  { %s17_s19 = sshll.u32 %s394_s18, 4  ;;  %p347_p0 = scmp.ne.s32.totalorder %s490_s0, %s346_s22  ;;  %s18_s19 = int_to_ptr.vmem [resolvable:$true] %s17_s19 }
   0x3   :  { %p350_p1 = scmp.lt.u32.totalorder %s346_s22, %s490_s0 }
   0x5   :  { %p352_p2 = pnand %p350_p1, %p347_p0 }
   0x7   :  { %355 = shalt.err (!%p352_p2)
}
   0x8   :  { %s356_s27 = scalar_lea.vmem %s18_s19, 256  ;;  %p361_p4 = scmp.lt.s32.totalorder %s18_s19, %s18_s19 }
   0x9   :  { %p357_p3 = scmp.ne.s32.totalorder %s18_s19, %s356_s27  ;;  %p362_p5 = scmp.lt.s32.totalorder %s356_s27, %s356_s27 }
   0xb   :  { %p363_p6 = por %p362_p5, %p361_p4 }
   0xd   :  { %p364_p7 = pnand %p363_p6, %p357_p3 }
   0xf   :  { %367 = shalt.err (!%p364_p7)
}
  0x10   :  { %s395_s28 = smov 128   ;;  %s396_s29 = smov 8  }
  0x11   :  { %23 = dma.hbm_to_vmem [thread:$0]  %s490_s0, 256, %s18_s19, [#allocation3], %s395_s28, %s395_s28, %s396_s29  }
  0x12   :  { %390 = dma.done.wait [#allocation3], 256  }
  0x13   :  { %391 = vsyncadd [#allocation3], 4294967040  ;;  %vm43_vm0 = vcmask 1043456   ;;  %v446_v0 = vld [vmem:[#allocation2] sm:$0xff]  ;;  %v448_v1 = vld [vmem:[#allocation2 + $0x8] sm:$0xff]  ;;  %v397_v11 = vmov 0.0   ;;  %v67_v12 = vlaneseq }
  0x14   :  { %v39_v2 = vcombine.high %v446_v0, %v446_v0  ;;  %v44_v3 = vsel %vm43_vm0, %v446_v0, 0.0  ;;  %v40_v4 = vcombine.high %v448_v1, %v448_v1  ;;  %v49_v6 = vsel %vm43_vm0, %v448_v1, 0.0  ;;  %v57_v10 = vld [vmem:[%s491_s1] sm:$0xf]  ;;  %319 = vmatprep.subr.mxu0 %v397_v11  ;;  %324 = vmatprep.subr.mxu1 %v397_v11 }
  0x15   :  { %vm398_vm1 = vmmov 0   ;;  %320 = vmatpush3.msk.msra.mxu0 %vm43_vm0, %v57_v10  ;;  %v68_v13 = vand.u32 127, %v67_v12  ;;  %v70_v14 = vshrl.u32 %v67_v12, 7  ;;  %vm77_vm2 = vcmask 1041409   ;;  %v162_v23 = vld [vmem:[%s493_s3] sm:$0x3] }
  0x16   :  { %v45_v5 = vsel %vm43_vm0, %v39_v2, 0.0  ;;  %v50_v7 = vsel %vm43_vm0, %v40_v4, 0.0  ;;  %321 = vmatprep.mubr.msk.f32.mxu0 %vm398_vm1, %v397_v11  ;;  %326 = vmatprep.mubr.msk.f32.mxu1 %vm398_vm1, %v397_v11  ;;  %vm79_vm3 = vcmask 31744   ;;  %vm174_vm4 = vcmask 1041408   ;;  %v307_v24 = vld [vmem:[%s492_s2] ss:$0 sm:$0xff] }
  0x17   :  { %v46_v8 = vadd.f32 %v45_v5, %v44_v3  ;;  %v51_v9 = vadd.f32 %v50_v7, %v49_v6  ;;  %v71_v16 = vsub.s32 %v68_v13, %v70_v14  ;;  %325 = vmatpush3.msk.msra.mxu1 %vm174_vm4, %v162_v23  ;;  %vm170_vm5 = vcmask 15360   ;;  %v311_v33 = vld [vmem:[%s494_s4] ss:$0 sm:$0xff]  ;;  %s400_s2 = smov [#allocation5]  }
  0x18   :  { %v256_v40 = vsub.s32 0, %v70_v14  ;;  %v263_v43 = vsub.s32 1, %v70_v14  ;;  %v399_v45 = vmov 839922192   ;;  %s295_s4 = sshll.u32 %s400_s2, 4  ;;  %s296_s4 = int_to_ptr.vmem [resolvable:$true] %s295_s4 }
  0x19   :  { %47 = vadd.xlane.f32.xlu0 %v46_v8  ;;  %v271_v46 = vunpack.c.l.s4 %v399_v45  ;;  %s368_s12 = scalar_lea.vmem %s296_s4, 256  ;;  %p373_p9 = scmp.lt.s32.totalorder %s296_s4, %s296_s4 }
  0x1a   :  { %p369_p8 = scmp.ne.s32.totalorder %s296_s4, %s368_s12  ;;  %p374_p10 = scmp.lt.s32.totalorder %s368_s12, %s368_s12 }
  0x1b   :  { %v272_v47 = vunpack.c.0.s8 %v271_v46 }
  0x1c   :  { %p375_p11 = por %p374_p10, %p373_p9 }
  0x1d   :  { %52 = vadd.xlane.f32.xlu0 %v51_v9  ;;  %v275_v48 = vsub.s32 %v272_v47, %v70_v14 }
  0x1e   :  { %p376_p12 = pnand %p375_p11, %p369_p8 }
  0xa6   :  { %v48_v15 = vpop.xlane.xlu0 %47 }
  0xa7   :  { %v55_v17 = vmul.f32 0.00390625, %v48_v15 }
  0xa9   :  { %v72_v20 = vrot.slane %v55_v17, %v71_v16 }
  0xaa   :  { %v53_v18 = vpop.xlane.xlu0 %52 }
  0xab   :  { %v56_v19 = vmul.f32 0.00390625, %v53_v18 }
  0xad   :  { %v76_v21 = vrot.slane %v56_v19, %v71_v16 }
  0xaf   :  { %v78_v22 = vsel %vm77_vm2, %v76_v21, %v72_v20 }
  0xb0   :  { %322 = vmatmul.mubr.msk.f32.vlgmr.msra.gmra.mrb[0].mxu0 %vm79_vm3, %v78_v22 }
 0x183   :  { %v151_v25 = vpop.f32.mrb[0].mxu0 }
 0x184   :  { %v152_v26 = vadd.f32 %v307_v24, %v151_v25  ;;  %v323_v27 = vpop.f32.mrb[1].mxu0 }
 0x186   :  { %v310_v28 = vmul.f32 -1.442695, %v152_v26 }
 0x188   :  { %338 = vpow2.f32 %v310_v28 }
 0x192   :  { %v339_v29 = vpop.eup %338 }
 0x193   :  { %v158_v30 = vadd.f32 1.0, %v339_v29 }
 0x195   :  { %340 = vrcp.f32 %v158_v30 }
 0x19f   :  { %v341_v31 = vpop.eup %340 }
 0x1a0   :  { %v161_v32 = vmul.f32 %v341_v31, %v152_v26 }
 0x1a2   :  { %327 = vmatmul.mubr.msk.f32.vlgmr.msra.gmra.mrb[0].mxu1 %vm170_vm5, %v161_v32 }
 0x275   :  { %v244_v34 = vpop.f32.mrb[0].mxu1 }
 0x276   :  { %v245_v35 = vadd.f32 %v311_v33, %v244_v34  ;;  %v328_v36 = vpop.f32.mrb[1].mxu1 }
 0x278   :  { %v314_v37 = vmul.f32 -1.442695, %v245_v35 }
 0x27a   :  { %342 = vpow2.f32 %v314_v37 }
 0x284   :  { %v343_v38 = vpop.eup %342 }
 0x285   :  { %v251_v39 = vadd.f32 1.0, %v343_v38 }
 0x287   :  { %344 = vrcp.f32 %v251_v39 }
 0x291   :  { %v345_v41 = vpop.eup %344 }
 0x292   :  { %v257_v42 = vrot.slane %v345_v41, %v256_v40  ;;  %v264_v44 = vrot.slane %v345_v41, %v263_v43 }
 0x294   :  { %259 = vbcast.lane.b32.xlu1 %v257_v42, 256 }
 0x298   :  { %266 = vbcast.lane.b32.xlu1 %v264_v44, 256 }
 0x306   :  { %v260_v49 = vpop.permute.xlu1 %259 }
 0x307   :  { %v276_v50 = vrot.slane %v260_v49, %v275_v48 }
 0x309   :  { %v286_v51 = vmul.f32 %v276_v50, %v446_v0 }
 0x30a   :  { %v267_v52 = vpop.permute.xlu1 %266 }
 0x30b   :  { %288 = vst [vmem:[#allocation5] sm:$0xff] %v286_v51  ;;  %v283_v53 = vrot.slane %v267_v52, %v275_v48 }
 0x30d   :  { %v287_v54 = vmul.f32 %v283_v53, %v448_v1 }
 0x30f   :  { %289 = vst [vmem:[#allocation5 + $0x8] sm:$0xff] %v287_v54 }
 0x310   :  { %379 = shalt.err (!%p376_p12)
}
 0x311   :  { %s380_s15 = scalar_lea.hbm %s495_s5, 256 }
 0x312   :  { %p381_p13 = scmp.ne.s32.totalorder %s495_s5, %s380_s15  ;;  %p384_p0 = scmp.lt.u32.totalorder %s380_s15, %s495_s5 }
 0x314   :  { %p386_p1 = pnand %p384_p0, %p381_p13 }
 0x316   :  { %389 = shalt.err (!%p386_p1)
}
 0x317   :  { %301 = dma.vmem_to_hbm [thread:$0]  %s296_s4, 256, %s495_s5, [#allocation4], %s395_s28, %s395_s28, %s396_s29  }
 0x318   :  { %392 = dma.done.wait [#allocation4], 256  }
 0x319   :  { %393 = vsyncadd [#allocation4], 4294967040 }
 0x31a   :  { %305 = vsyncpa [#allocation3], 1 }
 0x31b   :  { %306 = vsyncpa [#allocation4], 1 }

</bundles_post_ra>
